<compile_context>
chip_gen: v5e
topology: v5e:2x2
jax: 0.10.0
libtpu: 0.0.40
codegen_flags: <defaults>
</compile_context>

<pallas_src>
import jax
import jax.numpy as jnp
from jax import lax
from jax.experimental import pallas as pl
from jax.experimental.pallas import tpu as pltpu


_MXU_DTYPE = jnp.bfloat16                 # MXU operand dtype (f32 accumulate)
_VMEM_BUDGET_BYTES = 40 * 1024 * 1024     # conservative: fits v7x 64 MiB VMEM


def _round_up(x, m):
    return (x + m - 1) // m * m


def _layer_vmem_bytes(t_blk, b_blk, i_pad, h_pad):
    """Pipelined working set for one layer's pallas_call."""
    x_blk = t_blk * b_blk * i_pad * 2          # bf16 input block
    out_blk = t_blk * b_blk * h_pad * 4        # f32 output block
    weights = i_pad * h_pad * 2 + h_pad * h_pad * 2 + h_pad * 4  # single-buffered
    scratch = b_blk * h_pad * 4                # carried hidden state
    return 2 * x_blk + 2 * out_blk + weights + scratch  # x/out double-buffered


def _rnn_layer_kernel(x_ref, wih_t_ref, whh_t_ref, bias_ref, out_ref, h_scratch):
    """One vanilla-RNN layer, one (batch block, time block) grid step.

    x_ref:     (T_BLK, B_BLK, I_PAD) bf16   time-major input block
    wih_t_ref: (I_PAD, H_PAD)        bf16   weight_ih^T (zero padded)
    whh_t_ref: (H_PAD, H_PAD)        bf16   weight_hh^T (zero padded)
    bias_ref:  (1, H_PAD)            f32    b_ih + b_hh (zero padded)
    out_ref:   (T_BLK, B_BLK, H_PAD) f32    gates, then hidden states
    h_scratch: (B_BLK, H_PAD)        f32    hidden state persisted across the
                                            time grid axis
    """
    t_blk, b_blk, i_pad = x_ref.shape
    h_pad = out_ref.shape[-1]

    # h0 = zeros at the first time block of every batch block.
    @pl.when(pl.program_id(1) == 0)
    def _():
        h_scratch[...] = jnp.zeros_like(h_scratch)

    # Hoisted, time-parallel input projection (+ fused bias): one big MXU
    # matmul (bf16 operands, f32 accumulation) straight into the output block.
    x2d = x_ref[...].reshape(t_blk * b_blk, i_pad)
    gates = jnp.dot(x2d, wih_t_ref[...], preferred_element_type=jnp.float32)
    gates = gates + bias_ref[...]
    out_ref[...] = gates.reshape(t_blk, b_blk, h_pad).astype(out_ref.dtype)

    # Independent batch sub-tiles (>=8 rows each) -> independent serial chains
    # the scheduler can interleave (one sub-tile's MXU push overlaps another's
    # EUP tanh).
    n_sub = 1
    for cand in (4, 2):
        if b_blk % cand == 0 and (b_blk // cand) % 8 == 0:
            n_sub = cand
            break
    sub = b_blk // n_sub

    # Hidden state lives in the fori_loop carry (vregs); VMEM scratch is only
    # touched at the block boundaries.
    h_parts = tuple(h_scratch[s * sub:(s + 1) * sub, :] for s in range(n_sub))

    def body(t, h_parts):
        new_parts = []
        for s, h_prev in enumerate(h_parts):
            lo = s * sub
            pre = out_ref[t, lo:lo + sub, :] + jnp.dot(
                h_prev.astype(whh_t_ref.dtype), whh_t_ref[...],
                preferred_element_type=jnp.float32)
            h_new = jnp.tanh(pre)
            out_ref[t, lo:lo + sub, :] = h_new.astype(out_ref.dtype)
            new_parts.append(h_new)
        return tuple(new_parts)

    unroll = min(t_blk, 8)   # partial unroll: LLO visibility w/o vreg blowup
    h_parts = lax.fori_loop(0, t_blk, body, h_parts, unroll=unroll)

    # Persist the carried hidden state once per time block.
    for s, h_fin in enumerate(h_parts):
        h_scratch[s * sub:(s + 1) * sub, :] = h_fin


def _run_rnn_layer(x_pad, wih_t, whh_t, bias, *, t_blk, b_blk):
    """x_pad: (T_PAD, B_PAD, I_PAD) bf16 -> hidden states (T_PAD, B_PAD, H_PAD) f32."""
    T_pad, B_pad, I_pad = x_pad.shape
    H_pad = whh_t.shape[0]
    grid = (B_pad // b_blk, T_pad // t_blk)

    needed = _layer_vmem_bytes(t_blk, b_blk, I_pad, H_pad)
    vmem_limit = int(min(max(needed * 5 // 4 + (4 << 20), 16 << 20), 56 << 20))

    return pl.pallas_call(
        _rnn_layer_kernel,
        out_shape=jax.ShapeDtypeStruct((T_pad, B_pad, H_pad), jnp.float32),
        grid_spec=pltpu.PrefetchScalarGridSpec(
            num_scalar_prefetch=0,
            grid=grid,
            in_specs=[
                pl.BlockSpec((t_blk, b_blk, I_pad), lambda b, t: (t, b, 0)),
                # Grid-invariant weights/bias: single buffer (no double-buffer
                # VMEM waste).
                pl.BlockSpec((I_pad, H_pad), lambda b, t: (0, 0),
                             pipeline_mode=pl.Buffered(1)),
                pl.BlockSpec((H_pad, H_pad), lambda b, t: (0, 0),
                             pipeline_mode=pl.Buffered(1)),
                pl.BlockSpec((1, H_pad), lambda b, t: (0, 0),
                             pipeline_mode=pl.Buffered(1)),
            ],
            out_specs=pl.BlockSpec((t_blk, b_blk, H_pad), lambda b, t: (t, b, 0)),
            scratch_shapes=[pltpu.VMEM((b_blk, H_pad), jnp.float32)],
        ),
        compiler_params=pltpu.CompilerParams(
            # Batch blocks are independent -> megacore-shardable; the time
            # axis carries recurrent state in scratch -> arbitrary.
            dimension_semantics=("parallel", "arbitrary"),
            vmem_limit_bytes=vmem_limit,
        ),
    )(x_pad, wih_t, whh_t, bias)


def _prep_layer_params(w_ih, w_hh, b_ih, b_hh, in_feat_pad, H_pad):
    """Transpose + zero-pad the layer weights to lane-aligned shapes."""
    H, in_feat = w_ih.shape
    wih_t = (jnp.zeros((in_feat_pad, H_pad), _MXU_DTYPE)
             .at[:in_feat, :H].set(w_ih.T.astype(_MXU_DTYPE)))
    whh_t = (jnp.zeros((H_pad, H_pad), _MXU_DTYPE)
             .at[:H, :H].set(w_hh.T.astype(_MXU_DTYPE)))
    bias = (jnp.zeros((1, H_pad), jnp.float32)
            .at[0, :H].set((b_ih + b_hh).astype(jnp.float32)))
    return wih_t, whh_t, bias


def birnn_forward(input_data, params, hidden_size, num_layers=1, *, t_blk=32):
    """Mirrors biRNN.forward for bidirectional=False.

    input_data: (B, T, I).  Returns (hidden_states[:, -1, :], h0) exactly like
    the PyTorch module: hidden_states has shape (num_layers * T, B, H) and
    [:, -1, :] selects the LAST BATCH element -> (num_layers * T, H).
    """
    B, T, I = input_data.shape
    H = hidden_size
    num_directions = 1
    h0 = jnp.zeros((num_layers * num_directions, B, H), jnp.float32)

    if num_layers > 1 and I != H:
        # The module reuses weight_ih of shape (H, input_size) for every layer,
        # so layers > 0 only type-check when hidden_size == input_size.
        raise ValueError("num_layers > 1 requires hidden_size == input_size.")

    # Lane/sublane-aligned padded shapes.
    H_pad = _round_up(H, 128)
    I_pad = _round_up(I, 128)

    # Batch tiling: b_blk is a multiple of 8 from ceil-division of the padded
    # batch (minimal over-padding), capped at 256 rows (v6e/v7x MXU width).
    B_pad8 = _round_up(B, 8)
    n_bblk = max(1, -(-B_pad8 // 256))
    b_blk = _round_up(-(-B_pad8 // n_bblk), 8)
    B_pad = b_blk * n_bblk

    # Time tiling: bigger blocks amortize grid-step overhead and grow the M
    # dim of the hoisted projection, bounded by the VMEM budget.
    t_blk = max(1, min(t_blk, T))
    while t_blk > 1 and _layer_vmem_bytes(t_blk, b_blk, I_pad, H_pad) > _VMEM_BUDGET_BYTES:
        t_blk = max(1, t_blk // 2)
    T_pad = _round_up(T, t_blk)

    # Single batch-first -> time-major transpose; bf16 activations in HBM
    # (halves activation DMA); f32 accumulation/outputs inside the kernel.
    x_tbi = jnp.transpose(input_data, (1, 0, 2)).astype(_MXU_DTYPE)  # (T,B,I)
    layer_in = (jnp.zeros((T_pad, B_pad, I_pad), _MXU_DTYPE)
                .at[:T, :B, :I].set(x_tbi))

    hidden_states = []
    for layer in range(num_layers):
        w_ih, w_hh, b_ih, b_hh = params[layer]
        wih_t, whh_t, bias = _prep_layer_params(
            w_ih, w_hh, b_ih, b_hh, layer_in.shape[-1], H_pad)
        hs_pad = _run_rnn_layer(layer_in, wih_t, whh_t, bias,
                                t_blk=t_blk, b_blk=b_blk)  # (T_PAD,B_PAD,H_PAD)
        hidden_states.append(hs_pad[:T, :B, :H])
        # Next layer consumes the padded time-major tensor directly (no
        # per-layer transpose / HBM re-layout), as bf16.
        layer_in = hs_pad.astype(_MXU_DTYPE)

    hidden_states = jnp.concatenate(hidden_states, axis=0)  # (L*T, B, H)
    return hidden_states[:, -1, :], h0


def birnn_reference(input_data, params, hidden_size, num_layers=1):
    """Pure-JAX reference matching the PyTorch op ordering exactly (f32)."""
    B, T, I = input_data.shape
    h0 = jnp.zeros((num_layers, B, hidden_size), jnp.float32)
    hidden_states = []
    layer_input = input_data
    for layer in range(num_layers):
        w_ih, w_hh, b_ih, b_hh = params[layer]
        h_forward = h0[layer]
        layer_hs = []
        for t in range(T):
            x = layer_input[:, t, :]
            h_forward = jnp.tanh(
                x @ w_ih.T + b_ih + h_forward @ w_hh.T + b_hh
            )
            layer_hs.append(h_forward[None])
        hs = jnp.concatenate(layer_hs, axis=0)                  # (T, B, H)
        hidden_states.append(hs)
        layer_input = jnp.transpose(hs, (1, 0, 2))
    hidden_states = jnp.concatenate(hidden_states, axis=0)
    return hidden_states[:, -1, :], h0


def init_params(key, input_size, hidden_size, num_layers=1):
    stdv = 1.0 / (hidden_size ** 0.5)
    params = []
    for _layer in range(num_layers):
        key, k1, k2, k3, k4 = jax.random.split(key, 5)
        in_sz = input_size  # module uses the same input_size for all layers
        w_ih = jax.random.uniform(k1, (hidden_size, in_sz), jnp.float32, -stdv, stdv)
        w_hh = jax.random.uniform(k2, (hidden_size, hidden_size), jnp.float32, -stdv, stdv)
        b_ih = jax.random.uniform(k3, (hidden_size,), jnp.float32, -stdv, stdv)
        b_hh = jax.random.uniform(k4, (hidden_size,), jnp.float32, -stdv, stdv)
        params.append((w_ih, w_hh, b_ih, b_hh))
    return params


if __name__ == "__main__":
    batch, seq_len, input_size, hidden_size = 2, 8, 16, 32
    num_layers = 1

    key = jax.random.PRNGKey(0)
    key, k_x = jax.random.split(key)
    x = jax.random.normal(k_x, (batch, seq_len, input_size), jnp.float32)
    params = init_params(key, input_size, hidden_size, num_layers)

    out, h0 = birnn_forward(x, params, hidden_size, num_layers)
    out = jax.block_until_ready(out)
    h0 = jax.block_until_ready(h0)

    ref_out, ref_h0 = birnn_reference(x, params, hidden_size, num_layers)

    assert out.shape == (num_layers * seq_len, hidden_size), out.shape
    assert h0.shape == (num_layers, batch, hidden_size), h0.shape
    # bf16 MXU operands (f32 accumulation) -> loosened tolerance vs f32 reference.
    assert jnp.allclose(out, ref_out, atol=2e-2, rtol=2e-2), "mismatch vs reference"

    print("KERNEL_OK")
</pallas_src>

<mosaic_0001>
module attributes {stable_mosaic.version = 11 : i64} {
  func.func @_rnn_layer_kernel(%arg0: i32, %arg1: i32, %arg2: memref<8x8x128xbf16, #tpu.memory_space<vmem>>, %arg3: memref<128x128xbf16, #tpu.memory_space<vmem>>, %arg4: memref<128x128xbf16, #tpu.memory_space<vmem>>, %arg5: memref<1x128xf32, #tpu.memory_space<vmem>>, %arg6: memref<8x8x128xf32, #tpu.memory_space<vmem>>, %arg7: memref<8x128xf32, #tpu.memory_space<vmem>>) attributes {dimension_semantics = [#tpu.dimension_semantics<parallel>, #tpu.dimension_semantics<arbitrary>], iteration_bounds = array<i64: 1, 1>, scalar_prefetch = 0 : i64, scratch_operands = 1 : i64, tpu.core_type = #tpu.core_type<tc>, window_params = [{transform_indices = @transform_0, window_bounds = array<i64: 8, 8, 128>}, {pipeline_mode = #tpu.pipeline_mode<synchronous>, transform_indices = @transform_1, window_bounds = array<i64: 128, 128>}, {pipeline_mode = #tpu.pipeline_mode<synchronous>, transform_indices = @transform_2, window_bounds = array<i64: 128, 128>}, {pipeline_mode = #tpu.pipeline_mode<synchronous>, transform_indices = @transform_3, window_bounds = array<i64: 1, 128>}, {transform_indices = @transform_4, window_bounds = array<i64: 8, 8, 128>}]} {
    %c0_i32 = arith.constant 0 : i32
    %0 = arith.cmpi eq, %arg1, %c0_i32 : i32
    %1 = arith.extui %0 : i1 to i32
    %c0_i32_0 = arith.constant 0 : i32
    %2 = arith.cmpi ne, %1, %c0_i32_0 : i32
    scf.if %2 {
      %cst_71 = arith.constant 0.000000e+00 : f32
      %110 = vector.broadcast %cst_71 : f32 to vector<8x128xf32>
      %c0_72 = arith.constant 0 : index
      %c0_73 = arith.constant 0 : index
      %111 = vector.load %arg7[%c0_72, %c0_73] : memref<8x128xf32, #tpu.memory_space<vmem>>, vector<8x128xf32>
      tpu.vector_store %arg7[%c0_72, %c0_73], %110 {strides = array<i32>} : memref<8x128xf32, #tpu.memory_space<vmem>>, vector<8x128xf32>,
    } else {
    }
    %c0 = arith.constant 0 : index
    %c0_1 = arith.constant 0 : index
    %c0_2 = arith.constant 0 : index
    %3 = vector.load %arg2[%c0, %c0_1, %c0_2] : memref<8x8x128xbf16, #tpu.memory_space<vmem>>, vector<8x8x128xbf16>
    %4 = vector.shape_cast %3 : vector<8x8x128xbf16> to vector<64x128xbf16>
    %c0_3 = arith.constant 0 : index
    %c0_4 = arith.constant 0 : index
    %5 = vector.load %arg3[%c0_3, %c0_4] : memref<128x128xbf16, #tpu.memory_space<vmem>>, vector<128x128xbf16>
    %cst = arith.constant dense<0.000000e+00> : vector<64x128xf32>
    %6 = tpu.matmul %4, %5, %cst {dimension_numbers = #tpu.dot_dimension_numbers<[1], [0], [0], [1], [0, 0, 1, 1], [], []>} : vector<64x128xbf16>, vector<128x128xbf16>, vector<64x128xf32> -> vector<64x128xf32>
    %c0_5 = arith.constant 0 : index
    %c0_6 = arith.constant 0 : index
    %7 = vector.load %arg5[%c0_5, %c0_6] : memref<1x128xf32, #tpu.memory_space<vmem>>, vector<1x128xf32>
    %8 = vector.broadcast %7 : vector<1x128xf32> to vector<64x128xf32>
    %9 = arith.addf %6, %8 : vector<64x128xf32>
    %10 = vector.shape_cast %9 : vector<64x128xf32> to vector<8x8x128xf32>
    %c0_7 = arith.constant 0 : index
    %c0_8 = arith.constant 0 : index
    %c0_9 = arith.constant 0 : index
    %11 = vector.load %arg6[%c0_7, %c0_8, %c0_9] : memref<8x8x128xf32, #tpu.memory_space<vmem>>, vector<8x8x128xf32>
    tpu.vector_store %arg6[%c0_7, %c0_8, %c0_9], %10 {strides = array<i32>} : memref<8x8x128xf32, #tpu.memory_space<vmem>>, vector<8x8x128xf32>,
    %c0_10 = arith.constant 0 : index
    %c0_11 = arith.constant 0 : index
    %12 = vector.load %arg7[%c0_10, %c0_11] : memref<8x128xf32, #tpu.memory_space<vmem>>, vector<8x128xf32>
    %c0_i32_12 = arith.constant 0 : i32
    %13 = arith.index_cast %c0_i32_12 : i32 to index
    %c0_13 = arith.constant 0 : index
    %c0_14 = arith.constant 0 : index
    %14 = vector.load %arg6[%13, %c0_13, %c0_14] : memref<8x8x128xf32, #tpu.memory_space<vmem>>, vector<1x8x128xf32>
    %15 = vector.shape_cast %14 : vector<1x8x128xf32> to vector<8x128xf32>
    %16 = arith.truncf %12 : vector<8x128xf32> to vector<8x128xbf16>
    %c0_15 = arith.constant 0 : index
    %c0_16 = arith.constant 0 : index
    %17 = vector.load %arg4[%c0_15, %c0_16] : memref<128x128xbf16, #tpu.memory_space<vmem>>, vector<128x128xbf16>
    %cst_17 = arith.constant dense<0.000000e+00> : vector<8x128xf32>
    %18 = tpu.matmul %16, %17, %cst_17 {dimension_numbers = #tpu.dot_dimension_numbers<[1], [0], [0], [1], [0, 0, 1, 1], [], []>} : vector<8x128xbf16>, vector<128x128xbf16>, vector<8x128xf32> -> vector<8x128xf32>
    %19 = arith.addf %15, %18 : vector<8x128xf32>
    %20 = math.tanh %19 : vector<8x128xf32>
    %21 = arith.index_cast %c0_i32_12 : i32 to index
    %c0_18 = arith.constant 0 : index
    %c0_19 = arith.constant 0 : index
    %22 = vector.load %arg6[%21, %c0_18, %c0_19] : memref<8x8x128xf32, #tpu.memory_space<vmem>>, vector<1x8x128xf32>
    %23 = vector.shape_cast %22 : vector<1x8x128xf32> to vector<8x128xf32>
    %24 = vector.shape_cast %20 : vector<8x128xf32> to vector<1x8x128xf32>
    tpu.vector_store %arg6[%21, %c0_18, %c0_19], %24 {strides = array<i32>} : memref<8x8x128xf32, #tpu.memory_space<vmem>>, vector<1x8x128xf32>,
    %c1_i32 = arith.constant 1 : i32
    %25 = arith.index_cast %c1_i32 : i32 to index
    %c0_20 = arith.constant 0 : index
    %c0_21 = arith.constant 0 : index
    %26 = vector.load %arg6[%25, %c0_20, %c0_21] : memref<8x8x128xf32, #tpu.memory_space<vmem>>, vector<1x8x128xf32>
    %27 = vector.shape_cast %26 : vector<1x8x128xf32> to vector<8x128xf32>
    %28 = arith.truncf %20 : vector<8x128xf32> to vector<8x128xbf16>
    %c0_22 = arith.constant 0 : index
    %c0_23 = arith.constant 0 : index
    %29 = vector.load %arg4[%c0_22, %c0_23] : memref<128x128xbf16, #tpu.memory_space<vmem>>, vector<128x128xbf16>
    %cst_24 = arith.constant dense<0.000000e+00> : vector<8x128xf32>
    %30 = tpu.matmul %28, %29, %cst_24 {dimension_numbers = #tpu.dot_dimension_numbers<[1], [0], [0], [1], [0, 0, 1, 1], [], []>} : vector<8x128xbf16>, vector<128x128xbf16>, vector<8x128xf32> -> vector<8x128xf32>
    %31 = arith.addf %27, %30 : vector<8x128xf32>
    %32 = math.tanh %31 : vector<8x128xf32>
    %33 = arith.index_cast %c1_i32 : i32 to index
    %c0_25 = arith.constant 0 : index
    %c0_26 = arith.constant 0 : index
    %34 = vector.load %arg6[%33, %c0_25, %c0_26] : memref<8x8x128xf32, #tpu.memory_space<vmem>>, vector<1x8x128xf32>
    %35 = vector.shape_cast %34 : vector<1x8x128xf32> to vector<8x128xf32>
    %36 = vector.shape_cast %32 : vector<8x128xf32> to vector<1x8x128xf32>
    tpu.vector_store %arg6[%33, %c0_25, %c0_26], %36 {strides = array<i32>} : memref<8x8x128xf32, #tpu.memory_space<vmem>>, vector<1x8x128xf32>,
    %c2_i32 = arith.constant 2 : i32
    %37 = arith.index_cast %c2_i32 : i32 to index
    %c0_27 = arith.constant 0 : index
    %c0_28 = arith.constant 0 : index
    %38 = vector.load %arg6[%37, %c0_27, %c0_28] : memref<8x8x128xf32, #tpu.memory_space<vmem>>, vector<1x8x128xf32>
    %39 = vector.shape_cast %38 : vector<1x8x128xf32> to vector<8x128xf32>
    %40 = arith.truncf %32 : vector<8x128xf32> to vector<8x128xbf16>
    %c0_29 = arith.constant 0 : index
    %c0_30 = arith.constant 0 : index
    %41 = vector.load %arg4[%c0_29, %c0_30] : memref<128x128xbf16, #tpu.memory_space<vmem>>, vector<128x128xbf16>
    %cst_31 = arith.constant dense<0.000000e+00> : vector<8x128xf32>
    %42 = tpu.matmul %40, %41, %cst_31 {dimension_numbers = #tpu.dot_dimension_numbers<[1], [0], [0], [1], [0, 0, 1, 1], [], []>} : vector<8x128xbf16>, vector<128x128xbf16>, vector<8x128xf32> -> vector<8x128xf32>
    %43 = arith.addf %39, %42 : vector<8x128xf32>
    %44 = math.tanh %43 : vector<8x128xf32>
    %45 = arith.index_cast %c2_i32 : i32 to index
    %c0_32 = arith.constant 0 : index
    %c0_33 = arith.constant 0 : index
    %46 = vector.load %arg6[%45, %c0_32, %c0_33] : memref<8x8x128xf32, #tpu.memory_space<vmem>>, vector<1x8x128xf32>
    %47 = vector.shape_cast %46 : vector<1x8x128xf32> to vector<8x128xf32>
    %48 = vector.shape_cast %44 : vector<8x128xf32> to vector<1x8x128xf32>
    tpu.vector_store %arg6[%45, %c0_32, %c0_33], %48 {strides = array<i32>} : memref<8x8x128xf32, #tpu.memory_space<vmem>>, vector<1x8x128xf32>,
    %c3_i32 = arith.constant 3 : i32
    %49 = arith.index_cast %c3_i32 : i32 to index
    %c0_34 = arith.constant 0 : index
    %c0_35 = arith.constant 0 : index
    %50 = vector.load %arg6[%49, %c0_34, %c0_35] : memref<8x8x128xf32, #tpu.memory_space<vmem>>, vector<1x8x128xf32>
    %51 = vector.shape_cast %50 : vector<1x8x128xf32> to vector<8x128xf32>
    %52 = arith.truncf %44 : vector<8x128xf32> to vector<8x128xbf16>
    %c0_36 = arith.constant 0 : index
    %c0_37 = arith.constant 0 : index
    %53 = vector.load %arg4[%c0_36, %c0_37] : memref<128x128xbf16, #tpu.memory_space<vmem>>, vector<128x128xbf16>
    %cst_38 = arith.constant dense<0.000000e+00> : vector<8x128xf32>
    %54 = tpu.matmul %52, %53, %cst_38 {dimension_numbers = #tpu.dot_dimension_numbers<[1], [0], [0], [1], [0, 0, 1, 1], [], []>} : vector<8x128xbf16>, vector<128x128xbf16>, vector<8x128xf32> -> vector<8x128xf32>
    %55 = arith.addf %51, %54 : vector<8x128xf32>
    %56 = math.tanh %55 : vector<8x128xf32>
    %57 = arith.index_cast %c3_i32 : i32 to index
    %c0_39 = arith.constant 0 : index
    %c0_40 = arith.constant 0 : index
    %58 = vector.load %arg6[%57, %c0_39, %c0_40] : memref<8x8x128xf32, #tpu.memory_space<vmem>>, vector<1x8x128xf32>
    %59 = vector.shape_cast %58 : vector<1x8x128xf32> to vector<8x128xf32>
    %60 = vector.shape_cast %56 : vector<8x128xf32> to vector<1x8x128xf32>
    tpu.vector_store %arg6[%57, %c0_39, %c0_40], %60 {strides = array<i32>} : memref<8x8x128xf32, #tpu.memory_space<vmem>>, vector<1x8x128xf32>,
    %c4_i32 = arith.constant 4 : i32
    %61 = arith.index_cast %c4_i32 : i32 to index
    %c0_41 = arith.constant 0 : index
    %c0_42 = arith.constant 0 : index
    %62 = vector.load %arg6[%61, %c0_41, %c0_42] : memref<8x8x128xf32, #tpu.memory_space<vmem>>, vector<1x8x128xf32>
    %63 = vector.shape_cast %62 : vector<1x8x128xf32> to vector<8x128xf32>
    %64 = arith.truncf %56 : vector<8x128xf32> to vector<8x128xbf16>
    %c0_43 = arith.constant 0 : index
    %c0_44 = arith.constant 0 : index
    %65 = vector.load %arg4[%c0_43, %c0_44] : memref<128x128xbf16, #tpu.memory_space<vmem>>, vector<128x128xbf16>
    %cst_45 = arith.constant dense<0.000000e+00> : vector<8x128xf32>
    %66 = tpu.matmul %64, %65, %cst_45 {dimension_numbers = #tpu.dot_dimension_numbers<[1], [0], [0], [1], [0, 0, 1, 1], [], []>} : vector<8x128xbf16>, vector<128x128xbf16>, vector<8x128xf32> -> vector<8x128xf32>
    %67 = arith.addf %63, %66 : vector<8x128xf32>
    %68 = math.tanh %67 : vector<8x128xf32>
    %69 = arith.index_cast %c4_i32 : i32 to index
    %c0_46 = arith.constant 0 : index
    %c0_47 = arith.constant 0 : index
    %70 = vector.load %arg6[%69, %c0_46, %c0_47] : memref<8x8x128xf32, #tpu.memory_space<vmem>>, vector<1x8x128xf32>
    %71 = vector.shape_cast %70 : vector<1x8x128xf32> to vector<8x128xf32>
    %72 = vector.shape_cast %68 : vector<8x128xf32> to vector<1x8x128xf32>
    tpu.vector_store %arg6[%69, %c0_46, %c0_47], %72 {strides = array<i32>} : memref<8x8x128xf32, #tpu.memory_space<vmem>>, vector<1x8x128xf32>,
    %c5_i32 = arith.constant 5 : i32
    %73 = arith.index_cast %c5_i32 : i32 to index
    %c0_48 = arith.constant 0 : index
    %c0_49 = arith.constant 0 : index
    %74 = vector.load %arg6[%73, %c0_48, %c0_49] : memref<8x8x128xf32, #tpu.memory_space<vmem>>, vector<1x8x128xf32>
    %75 = vector.shape_cast %74 : vector<1x8x128xf32> to vector<8x128xf32>
    %76 = arith.truncf %68 : vector<8x128xf32> to vector<8x128xbf16>
    %c0_50 = arith.constant 0 : index
    %c0_51 = arith.constant 0 : index
    %77 = vector.load %arg4[%c0_50, %c0_51] : memref<128x128xbf16, #tpu.memory_space<vmem>>, vector<128x128xbf16>
    %cst_52 = arith.constant dense<0.000000e+00> : vector<8x128xf32>
    %78 = tpu.matmul %76, %77, %cst_52 {dimension_numbers = #tpu.dot_dimension_numbers<[1], [0], [0], [1], [0, 0, 1, 1], [], []>} : vector<8x128xbf16>, vector<128x128xbf16>, vector<8x128xf32> -> vector<8x128xf32>
    %79 = arith.addf %75, %78 : vector<8x128xf32>
    %80 = math.tanh %79 : vector<8x128xf32>
    %81 = arith.index_cast %c5_i32 : i32 to index
    %c0_53 = arith.constant 0 : index
    %c0_54 = arith.constant 0 : index
    %82 = vector.load %arg6[%81, %c0_53, %c0_54] : memref<8x8x128xf32, #tpu.memory_space<vmem>>, vector<1x8x128xf32>
    %83 = vector.shape_cast %82 : vector<1x8x128xf32> to vector<8x128xf32>
    %84 = vector.shape_cast %80 : vector<8x128xf32> to vector<1x8x128xf32>
    tpu.vector_store %arg6[%81, %c0_53, %c0_54], %84 {strides = array<i32>} : memref<8x8x128xf32, #tpu.memory_space<vmem>>, vector<1x8x128xf32>,
    %c6_i32 = arith.constant 6 : i32
    %85 = arith.index_cast %c6_i32 : i32 to index
    %c0_55 = arith.constant 0 : index
    %c0_56 = arith.constant 0 : index
    %86 = vector.load %arg6[%85, %c0_55, %c0_56] : memref<8x8x128xf32, #tpu.memory_space<vmem>>, vector<1x8x128xf32>
    %87 = vector.shape_cast %86 : vector<1x8x128xf32> to vector<8x128xf32>
    %88 = arith.truncf %80 : vector<8x128xf32> to vector<8x128xbf16>
    %c0_57 = arith.constant 0 : index
    %c0_58 = arith.constant 0 : index
    %89 = vector.load %arg4[%c0_57, %c0_58] : memref<128x128xbf16, #tpu.memory_space<vmem>>, vector<128x128xbf16>
    %cst_59 = arith.constant dense<0.000000e+00> : vector<8x128xf32>
    %90 = tpu.matmul %88, %89, %cst_59 {dimension_numbers = #tpu.dot_dimension_numbers<[1], [0], [0], [1], [0, 0, 1, 1], [], []>} : vector<8x128xbf16>, vector<128x128xbf16>, vector<8x128xf32> -> vector<8x128xf32>
    %91 = arith.addf %87, %90 : vector<8x128xf32>
    %92 = math.tanh %91 : vector<8x128xf32>
    %93 = arith.index_cast %c6_i32 : i32 to index
    %c0_60 = arith.constant 0 : index
    %c0_61 = arith.constant 0 : index
    %94 = vector.load %arg6[%93, %c0_60, %c0_61] : memref<8x8x128xf32, #tpu.memory_space<vmem>>, vector<1x8x128xf32>
    %95 = vector.shape_cast %94 : vector<1x8x128xf32> to vector<8x128xf32>
    %96 = vector.shape_cast %92 : vector<8x128xf32> to vector<1x8x128xf32>
    tpu.vector_store %arg6[%93, %c0_60, %c0_61], %96 {strides = array<i32>} : memref<8x8x128xf32, #tpu.memory_space<vmem>>, vector<1x8x128xf32>,
    %c7_i32 = arith.constant 7 : i32
    %97 = arith.index_cast %c7_i32 : i32 to index
    %c0_62 = arith.constant 0 : index
    %c0_63 = arith.constant 0 : index
    %98 = vector.load %arg6[%97, %c0_62, %c0_63] : memref<8x8x128xf32, #tpu.memory_space<vmem>>, vector<1x8x128xf32>
    %99 = vector.shape_cast %98 : vector<1x8x128xf32> to vector<8x128xf32>
    %100 = arith.truncf %92 : vector<8x128xf32> to vector<8x128xbf16>
    %c0_64 = arith.constant 0 : index
    %c0_65 = arith.constant 0 : index
    %101 = vector.load %arg4[%c0_64, %c0_65] : memref<128x128xbf16, #tpu.memory_space<vmem>>, vector<128x128xbf16>
    %cst_66 = arith.constant dense<0.000000e+00> : vector<8x128xf32>
    %102 = tpu.matmul %100, %101, %cst_66 {dimension_numbers = #tpu.dot_dimension_numbers<[1], [0], [0], [1], [0, 0, 1, 1], [], []>} : vector<8x128xbf16>, vector<128x128xbf16>, vector<8x128xf32> -> vector<8x128xf32>
    %103 = arith.addf %99, %102 : vector<8x128xf32>
    %104 = math.tanh %103 : vector<8x128xf32>
    %105 = arith.index_cast %c7_i32 : i32 to index
    %c0_67 = arith.constant 0 : index
    %c0_68 = arith.constant 0 : index
    %106 = vector.load %arg6[%105, %c0_67, %c0_68] : memref<8x8x128xf32, #tpu.memory_space<vmem>>, vector<1x8x128xf32>
    %107 = vector.shape_cast %106 : vector<1x8x128xf32> to vector<8x128xf32>
    %108 = vector.shape_cast %104 : vector<8x128xf32> to vector<1x8x128xf32>
    tpu.vector_store %arg6[%105, %c0_67, %c0_68], %108 {strides = array<i32>} : memref<8x8x128xf32, #tpu.memory_space<vmem>>, vector<1x8x128xf32>,
    %c8_i32 = arith.constant 8 : i32
    %c0_69 = arith.constant 0 : index
    %c0_70 = arith.constant 0 : index
    %109 = vector.load %arg7[%c0_69, %c0_70] : memref<8x128xf32, #tpu.memory_space<vmem>>, vector<8x128xf32>
    tpu.vector_store %arg7[%c0_69, %c0_70], %104 {strides = array<i32>} : memref<8x128xf32, #tpu.memory_space<vmem>>, vector<8x128xf32>,
    return
  }
  func.func @transform_0(%arg0: i32, %arg1: i32) -> (i32, i32, i32) {
    %c0_i32 = arith.constant 0 : i32
    %c0_i32_0 = arith.constant 0 : i32
    return %arg1, %arg0, %c0_i32 : i32, i32, i32
  }
  func.func @transform_1(%arg0: i32, %arg1: i32) -> (i32, i32) {
    %c0_i32 = arith.constant 0 : i32
    %c0_i32_0 = arith.constant 0 : i32
    %c0_i32_1 = arith.constant 0 : i32
    return %c0_i32, %c0_i32_0 : i32, i32
  }
  func.func @transform_2(%arg0: i32, %arg1: i32) -> (i32, i32) {
    %c0_i32 = arith.constant 0 : i32
    %c0_i32_0 = arith.constant 0 : i32
    %c0_i32_1 = arith.constant 0 : i32
    return %c0_i32, %c0_i32_0 : i32, i32
  }
  func.func @transform_3(%arg0: i32, %arg1: i32) -> (i32, i32) {
    %c0_i32 = arith.constant 0 : i32
    %c0_i32_0 = arith.constant 0 : i32
    %c0_i32_1 = arith.constant 0 : i32
    return %c0_i32, %c0_i32_0 : i32, i32
  }
  func.func @transform_4(%arg0: i32, %arg1: i32) -> (i32, i32, i32) {
    %c0_i32 = arith.constant 0 : i32
    %c0_i32_0 = arith.constant 0 : i32
    return %arg1, %arg0, %c0_i32 : i32, i32, i32
  }
}

</mosaic_0001>

<bundles_post_ra>
// kernel: tpu_custom_call.1
= control target key start
LH: loop header
LB: loop body
LE: loop exit
PB: predicated region body
PF: predicated region fallthrough
CT: control target
= control target key end

     0   :  { %9 = vsyncpa [#allocation4], 0  ;;  %s1459_s0 = inlined_call_operand.hbm [shape: bf16[8,8,128], index: 0, kind: input, shape index: {}]   ;;  %s1460_s1 = inlined_call_operand.hbm [shape: bf16[128,128], index: 1, kind: input, shape index: {}]   ;;  %s1461_s2 = inlined_call_operand.hbm [shape: bf16[128,128], index: 2, kind: input, shape index: {}]   ;;  %s1462_s3 = inlined_call_operand.vmem [shape: f32[1,128], index: 3, kind: input, shape index: {}]   ;;  %s1463_s4 = inlined_call_operand.hbm [shape: f32[8,8,128], index: 4, kind: output, shape index: {}]  }
   0x1   :  { %10 = vsyncpa [#allocation7], 0 }
   0x2   :  { %11 = vsyncpa [#allocation5], 0  ;;  %s29_s17 = sshll.u32 %s1460_s1, 4  ;;  %s1400_s18 = smov [#allocation6]   ;;  %s30_s17 = int_to_ptr.hbm [resolvable:$true] %s29_s17 }
   0x3   :  { %s31_s19 = sshll.u32 %s1400_s18, 4  ;;  %s16_s22 = sshll.u32 %s1459_s0, 4  ;;  %s32_s19 = int_to_ptr.vmem [resolvable:$true] %s31_s19  ;;  %s17_s22 = int_to_ptr.hbm [resolvable:$true] %s16_s22 }
   0x4   :  { %s1401_s23 = smov 64   ;;  %s1402_s24 = smov 4  }
   0x5   :  { %37 = dma.hbm_to_vmem [thread:$0]  %s30_s17, 1024, %s32_s19, [#allocation7], %s1401_s23, %s1401_s23, %s1402_s24  }
   0x6   :  { %s1403_s25 = smov [#allocation3]   ;;  %s42_s29 = sshll.u32 %s1461_s2, 4  ;;  %s43_s29 = int_to_ptr.hbm [resolvable:$true] %s42_s29 }
   0x7   :  { %s18_s26 = sshll.u32 %s1403_s25, 4  ;;  %s1404_s1 = smov [#allocation8]   ;;  %s19_s26 = int_to_ptr.vmem [resolvable:$true] %s18_s26 }
   0x8   :  { %24 = dma.hbm_to_vmem [thread:$0]  %s17_s22, 512, %s19_s26, [#allocation4], %s1401_s23, %s1401_s23, %s1402_s24  }
   0x9   :  { %s44_s30 = sshll.u32 %s1404_s1, 4  ;;  %s45_s30 = int_to_ptr.vmem [resolvable:$true] %s44_s30 }
   0xa   :  { %50 = dma.hbm_to_vmem [thread:$0]  %s43_s29, 1024, %s45_s30, [#allocation7], %s1401_s23, %s1401_s23, %s1402_s24  }
   0xb   :  { %1394 = dma.done.wait [#allocation4], 512  }
   0xc   :  { %1395 = vsyncadd [#allocation4], 4294966784 }
   0xd   :  { %1396 = dma.done.wait [#allocation7], 2048  }
   0xe   :  { %1397 = vsyncadd [#allocation7], 4294965248  ;;  %v1207_v0 = vld [vmem:[#allocation6 + $0x38] sm:$0xff]  ;;  %v1206_v2 = vld [vmem:[#allocation6 + $0x30] sm:$0xff]  ;;  %v1405_v20 = vmov 0.0|0.0   ;;  %s878_s8 = sshll.u32 %s1463_s4, 4  ;;  %s879_s8 = int_to_ptr.hbm [resolvable:$true] %s878_s8 }
   0xf   :  { %v1215_v1 = vld [vmem:[#allocation8 + $0x38] sm:$0xff]  ;;  %170 = vmatpush.bf16.msra.mxu0 %v1207_v0  ;;  %v1214_v3 = vld [vmem:[#allocation8 + $0x30] sm:$0xff]  ;;  %v1205_v5 = vld [vmem:[#allocation6 + $0x28] sm:$0xff]  ;;  %s1407_s9 = smov 128   ;;  %s1408_s10 = smov 8  }
  0x10   :  { %274 = vmatpush.bf16.msra.mxu1 %v1215_v1  ;;  %v1223_v4 = vld [vmem:[#allocation8 + $0x38] sm:$0xff]  ;;  %v1213_v6 = vld [vmem:[#allocation8 + $0x28] sm:$0xff]  ;;  %v1222_v7 = vld [vmem:[#allocation8 + $0x30] sm:$0xff] }
  0x11   :  { %357 = vmatpush.bf16.msra.mxu2 %v1223_v4  ;;  %v1204_v8 = vld [vmem:[#allocation6 + $0x20] sm:$0xff]  ;;  %v1221_v10 = vld [vmem:[#allocation8 + $0x28] sm:$0xff]  ;;  %v1203_v11 = vld [vmem:[#allocation6 + $0x18] sm:$0xff] }
  0x12   :  { %v1212_v9 = vld [vmem:[#allocation8 + $0x20] sm:$0xff]  ;;  %v1211_v12 = vld [vmem:[#allocation8 + $0x18] sm:$0xff]  ;;  %v1202_v13 = vld [vmem:[#allocation6 + $0x10] sm:$0xff] }
  0x13   :  { %171 = vmatpush.bf16.msra.mxu0 %v1206_v2  ;;  %v1210_v14 = vld [vmem:[#allocation8 + $0x10] sm:$0xff]  ;;  %v1201_v15 = vld [vmem:[#allocation6 + $0x8] sm:$0xff]  ;;  %v1200_v17 = vld [vmem:[#allocation6] sm:$0xff] }
  0x14   :  { %275 = vmatpush.bf16.msra.mxu1 %v1214_v3  ;;  %v1209_v16 = vld [vmem:[#allocation8 + $0x8] sm:$0xff]  ;;  %v1208_v18 = vld [vmem:[#allocation8] sm:$0xff]  ;;  %v1219_v22 = vld [vmem:[#allocation8 + $0x18] sm:$0xff] }
  0x15   :  { %358 = vmatpush.bf16.msra.mxu2 %v1222_v7  ;;  %v1196_v19 = vld [vmem:[#allocation3] sm:$0xff]  ;;  %v1218_v23 = vld [vmem:[#allocation8 + $0x10] sm:$0xff]  ;;  %v1217_v24 = vld [vmem:[#allocation8 + $0x8] sm:$0xff] }
  0x16   :  { %v1220_v21 = vld [vmem:[#allocation8 + $0x20] sm:$0xff]  ;;  %v1231_v26 = vld [vmem:[#allocation8 + $0x38] sm:$0xff]  ;;  %v1197_v27 = vld [vmem:[#allocation3 + $0x8] sm:$0xff] }
  0x17   :  { %172 = vmatpush.bf16.msra.mxu0 %v1205_v5  ;;  %v1216_v25 = vld [vmem:[#allocation8] sm:$0xff]  ;;  %440 = vmatpush.bf16.msra.mxu3 %v1231_v26  ;;  %v1230_v28 = vld [vmem:[#allocation8 + $0x30] sm:$0xff]  ;;  %v1229_v29 = vld [vmem:[#allocation8 + $0x28] sm:$0xff] }
  0x18   :  { %276 = vmatpush.bf16.msra.mxu1 %v1213_v6  ;;  %v1228_v30 = vld [vmem:[#allocation8 + $0x20] sm:$0xff]  ;;  %v1227_v31 = vld [vmem:[#allocation8 + $0x18] sm:$0xff]  ;;  %v1226_v40 = vld [vmem:[#allocation8 + $0x10] sm:$0xff] }
  0x19   :  { %359 = vmatpush.bf16.msra.mxu2 %v1221_v10  ;;  %v1446_v32 = vld [vmem:[%s1462_s3] ss:$0 sm:$0xff]  ;;  %v1225_v41 = vld [vmem:[#allocation8 + $0x8] sm:$0xff]  ;;  %v1239_v43 = vld [vmem:[#allocation8 + $0x38] sm:$0xff]  ;;  %s1406_s3 = smov [#allocation9]  }
  0x1a   :  { %v1224_v42 = vld [vmem:[#allocation8] sm:$0xff]  ;;  %v1238_v44 = vld [vmem:[#allocation8 + $0x30] sm:$0xff]  ;;  %v1237_v45 = vld [vmem:[#allocation8 + $0x28] sm:$0xff]  ;;  %s876_s5 = sshll.u32 %s1406_s3, 4  ;;  %s877_s5 = int_to_ptr.vmem [resolvable:$true] %s876_s5 }
  0x1b   :  { %173 = vmatpush.bf16.msra.mxu0 %v1204_v8  ;;  %441 = vmatpush.bf16.msra.mxu3 %v1230_v28  ;;  %v1236_v46 = vld [vmem:[#allocation8 + $0x20] sm:$0xff]  ;;  %v1235_v47 = vld [vmem:[#allocation8 + $0x18] sm:$0xff]  ;;  %v1234_v55 = vld [vmem:[#allocation8 + $0x10] sm:$0xff] }
  0x1c   :  { %277 = vmatpush.bf16.msra.mxu1 %v1212_v9  ;;  %v1233_v56 = vld [vmem:[#allocation8 + $0x8] sm:$0xff]  ;;  %v1232_v57 = vld [vmem:[#allocation8] sm:$0xff]  ;;  %v1247_v58 = vld [vmem:[#allocation8 + $0x38] sm:$0xff] }
  0x1d   :  { %360 = vmatpush.bf16.msra.mxu2 %v1220_v21  ;;  %v1198_v59 = vld [vmem:[#allocation3 + $0x10] sm:$0xff]  ;;  %v1245_v61 = vld [vmem:[#allocation8 + $0x28] sm:$0xff]  ;;  %v1244_v62 = vld [vmem:[#allocation8 + $0x20] sm:$0xff] }
  0x1e   :  { %v1246_v60 = vld [vmem:[#allocation8 + $0x30] sm:$0xff]  ;;  %v1243_v63 = vld [vmem:[#allocation8 + $0x18] sm:$0xff]  ;;  %v1241_v8 = vld [vmem:[#allocation8 + $0x8] sm:$0xff] }
  0x1f   :  { %174 = vmatpush.bf16.msra.mxu0 %v1203_v11  ;;  %442 = vmatpush.bf16.msra.mxu3 %v1229_v29  ;;  %v1242_v7 = vld [vmem:[#allocation8 + $0x10] sm:$0xff]  ;;  %v1240_v9 = vld [vmem:[#allocation8] sm:$0xff]  ;;  %v1255_v10 = vld [vmem:[#allocation8 + $0x38] sm:$0xff] }
  0x20   :  { %278 = vmatpush.bf16.msra.mxu1 %v1211_v12  ;;  %v1254_v11 = vld [vmem:[#allocation8 + $0x30] sm:$0xff]  ;;  %v1253_v12 = vld [vmem:[#allocation8 + $0x28] sm:$0xff]  ;;  %v1199_v26 = vld [vmem:[#allocation3 + $0x18] sm:$0xff] }
  0x21   :  { %361 = vmatpush.bf16.msra.mxu2 %v1219_v22  ;;  %v1250_v22 = vld [vmem:[#allocation8 + $0x10] sm:$0xff]  ;;  %v1261_v28 = vld [vmem:[#allocation8 + $0x28] sm:$0xff]  ;;  %v1260_v29 = vld [vmem:[#allocation8 + $0x20] sm:$0xff] }
  0x23   :  { %175 = vmatpush.bf16.msra.mxu0 %v1202_v13  ;;  %443 = vmatpush.bf16.msra.mxu3 %v1228_v30  ;;  %v1252_v13 = vld [vmem:[#allocation8 + $0x20] sm:$0xff]  ;;  %v1259_v30 = vld [vmem:[#allocation8 + $0x18] sm:$0xff] }
  0x24   :  { %279 = vmatpush.bf16.msra.mxu1 %v1210_v14  ;;  %v1251_v14 = vld [vmem:[#allocation8 + $0x18] sm:$0xff] }
  0x25   :  { %362 = vmatpush.bf16.msra.mxu2 %v1218_v23  ;;  %v1249_v23 = vld [vmem:[#allocation8 + $0x8] sm:$0xff] }
  0x27   :  { %176 = vmatpush.bf16.msra.mxu0 %v1201_v15  ;;  %444 = vmatpush.bf16.msra.mxu3 %v1227_v31 }
  0x28   :  { %280 = vmatpush.bf16.msra.mxu1 %v1209_v16 }
  0x29   :  { %363 = vmatpush.bf16.msra.mxu2 %v1217_v24  ;;  %v1248_v24 = vld [vmem:[#allocation8] sm:$0xff] }
  0x2b   :  { %177 = vmatpush.bf16.msra.mxu0 %v1200_v17  ;;  %445 = vmatpush.bf16.msra.mxu3 %v1226_v40 }
  0x2c   :  { %281 = vmatpush.bf16.msra.mxu1 %v1208_v18 }
  0x2d   :  { %364 = vmatpush.bf16.msra.mxu2 %v1216_v25  ;;  %v1263_v25 = vld [vmem:[#allocation8 + $0x38] sm:$0xff] }
  0x2e   :  { %178 = vmatmul.bf16.vlgmr.msra.gmra.mxu0 %v1196_v19 }
  0x2f   :  { %282 = vmatmul.bf16.vlgmr.msra.gmra.mxu1 %v1405_v20  ;;  %446 = vmatpush.bf16.msra.mxu3 %v1225_v41  ;;  %v1256_v41 = vld [vmem:[#allocation8] sm:$0xff] }
  0x30   :  { %523 = vmatpush.bf16.msrb.mxu1 %v1239_v43  ;;  %772 = vmatpush.bf16.msrb.mxu0 %v1263_v25  ;;  %v1270_v43 = vld [vmem:[#allocation8 + $0x30] sm:$0xff] }
  0x31   :  { %606 = vmatpush.bf16.msrb.mxu2 %v1247_v58 }
  0x33   :  { %447 = vmatpush.bf16.msra.mxu3 %v1224_v42  ;;  %v1271_v42 = vld [vmem:[#allocation8 + $0x38] sm:$0xff] }
  0x34   :  { %524 = vmatpush.bf16.msrb.mxu1 %v1238_v44  ;;  %v1269_v44 = vld [vmem:[#allocation8 + $0x28] sm:$0xff] }
  0x35   :  { %607 = vmatpush.bf16.msrb.mxu2 %v1246_v60 }
  0x37   :  { %689 = vmatpush.bf16.msrb.mxu3 %v1255_v10 }
  0x38   :  { %525 = vmatpush.bf16.msrb.mxu1 %v1237_v45  ;;  %v1268_v45 = vld [vmem:[#allocation8 + $0x20] sm:$0xff] }
  0x39   :  { %608 = vmatpush.bf16.msrb.mxu2 %v1245_v61 }
  0x3b   :  { %690 = vmatpush.bf16.msrb.mxu3 %v1254_v11 }
  0x3c   :  { %526 = vmatpush.bf16.msrb.mxu1 %v1236_v46  ;;  %v1267_v46 = vld [vmem:[#allocation8 + $0x18] sm:$0xff] }
  0x3d   :  { %609 = vmatpush.bf16.msrb.mxu2 %v1244_v62 }
  0x3e   :  { %183 = vmatmul.bf16.gmra.mxu0 %v1197_v27  ;;  %v1262_v27 = vld [vmem:[#allocation8 + $0x30] sm:$0xff] }
  0x3f   :  { %691 = vmatpush.bf16.msrb.mxu3 %v1253_v12  ;;  %773 = vmatpush.bf16.msrb.mxu0 %v1262_v27 }
  0x40   :  { %527 = vmatpush.bf16.msrb.mxu1 %v1235_v47 }
  0x41   :  { %610 = vmatpush.bf16.msrb.mxu2 %v1243_v63 }
  0x43   :  { %692 = vmatpush.bf16.msrb.mxu3 %v1252_v13  ;;  %774 = vmatpush.bf16.msrb.mxu0 %v1261_v28 }
  0x44   :  { %528 = vmatpush.bf16.msrb.mxu1 %v1234_v55  ;;  %v1265_v55 = vld [vmem:[#allocation8 + $0x8] sm:$0xff] }
  0x45   :  { %611 = vmatpush.bf16.msrb.mxu2 %v1242_v7 }
  0x47   :  { %693 = vmatpush.bf16.msrb.mxu3 %v1251_v14  ;;  %775 = vmatpush.bf16.msrb.mxu0 %v1260_v29 }
  0x48   :  { %529 = vmatpush.bf16.msrb.mxu1 %v1233_v56  ;;  %v1264_v56 = vld [vmem:[#allocation8] sm:$0xff] }
  0x49   :  { %612 = vmatpush.bf16.msrb.mxu2 %v1241_v8 }
  0x4b   :  { %694 = vmatpush.bf16.msrb.mxu3 %v1250_v22  ;;  %776 = vmatpush.bf16.msrb.mxu0 %v1259_v30 }
  0x4c   :  { %530 = vmatpush.bf16.msrb.mxu1 %v1232_v57 }
  0x4d   :  { %613 = vmatpush.bf16.msrb.mxu2 %v1240_v9 }
  0x4e   :  { %188 = vmatmul.bf16.gmra.mxu0 %v1198_v59 }
  0x4f   :  { %695 = vmatpush.bf16.msrb.mxu3 %v1249_v23 }
  0x50   :  { %855 = vmatpush.bf16.msra.mxu1 %v1271_v42 }
  0x53   :  { %696 = vmatpush.bf16.msrb.mxu3 %v1248_v24 }
  0x54   :  { %856 = vmatpush.bf16.msra.mxu1 %v1270_v43 }
  0x58   :  { %857 = vmatpush.bf16.msra.mxu1 %v1269_v44 }
  0x5c   :  { %858 = vmatpush.bf16.msra.mxu1 %v1268_v45 }
  0x5e   :  { %193 = vmatmul.bf16.gmra.mxu0 %v1199_v26 }
  0x60   :  { %859 = vmatpush.bf16.msra.mxu1 %v1267_v46 }
  0xab   :  { %v179_v33 = vpop.f32.mrf.mxu0 }
  0xac   :  { %v283_v34 = vpop.f32.mrf.mxu1  ;;  %v180_v35 = vadd.f32 %v1446_v32, %v179_v33 }
  0xae   :  { %v287_v36 = vadd.f32 %v283_v34, %v180_v35  ;;  %v1258_v34 = vld [vmem:[#allocation8 + $0x10] sm:$0xff] }
  0xaf   :  { %777 = vmatpush.bf16.msrb.mxu0 %v1258_v34 }
  0xb0   :  { %1282 = vtanh.f32 %v287_v36 }
  0xb3   :  { %v181_v48 = vpop.f32.mrf.mxu0 }
  0xb4   :  { %v285_v37 = vpop.f32.mrf.mxu1  ;;  %v182_v49 = vadd.f32 %v1446_v32, %v181_v48 }
  0xb5   :  { %v1257_v37 = vld [vmem:[#allocation8 + $0x8] sm:$0xff] }
  0xb6   :  { %v1283_v38 = vpop.eup %1282  ;;  %778 = vmatpush.bf16.msrb.mxu0 %v1257_v37 }
  0xb7   :  { %289 = vst [vmem:[#allocation9] sm:$0xff] %v1283_v38  ;;  %v292_v39 = vpack.c.bf16 %v1283_v38, %v1283_v38 }
  0xb9   :  { %365 = vmatmul.bf16.vlgmr.msra.gmra.mxu2 %v292_v39 }
  0xba   :  { %779 = vmatpush.bf16.msrb.mxu0 %v1256_v41 }
  0xbb   :  { %v184_v0 = vpop.f32.mrf.mxu0 }
  0xbc   :  { %v185_v1 = vadd.f32 %v1446_v32, %v184_v0 }
  0xc3   :  { %v186_v15 = vpop.f32.mrf.mxu0 }
  0xc4   :  { %v187_v16 = vadd.f32 %v1446_v32, %v186_v15 }
  0xcb   :  { %v189_v31 = vpop.f32.mrf.mxu0 }
  0xcc   :  { %v190_v33 = vadd.f32 %v1446_v32, %v189_v31 }
  0xd3   :  { %v191_v47 = vpop.f32.mrf.mxu0 }
  0xd4   :  { %v192_v48 = vadd.f32 %v1446_v32, %v191_v47 }
  0xdb   :  { %v194_v57 = vpop.f32.mrf.mxu0 }
  0xdc   :  { %v195_v59 = vadd.f32 %v1446_v32, %v194_v57 }
  0xe3   :  { %v196_v58 = vpop.f32.mrf.mxu0 }
 0x13c   :  { %v366_v50 = vpop.f32.mrf.mxu2 }
 0x13d   :  { %v370_v51 = vadd.f32 %v366_v50, %v182_v49 }
 0x13f   :  { %1284 = vtanh.f32 %v370_v51 }
 0x144   :  { %v368_v52 = vpop.f32.mrf.mxu2 }
 0x145   :  { %v1285_v53 = vpop.eup %1284 }
 0x146   :  { %372 = vst [vmem:[#allocation9 + $0x8] sm:$0xff] %v1285_v53  ;;  %v375_v54 = vpack.c.bf16 %v1285_v53, %v1285_v53 }
 0x148   :  { %448 = vmatmul.bf16.vlgmr.msra.gmra.mxu3 %v375_v54  ;;  %v1266_v54 = vld [vmem:[#allocation8 + $0x10] sm:$0xff] }
 0x149   :  { %860 = vmatpush.bf16.msra.mxu1 %v1266_v54 }
 0x14d   :  { %861 = vmatpush.bf16.msra.mxu1 %v1265_v55 }
 0x151   :  { %862 = vmatpush.bf16.msra.mxu1 %v1264_v56 }
 0x1cb   :  { %v449_v2 = vpop.f32.mrf.mxu3 }
 0x1cc   :  { %v453_v3 = vadd.f32 %v449_v2, %v185_v1  ;;  %v197_v1 = vadd.f32 %v1446_v32, %v196_v58 }
 0x1ce   :  { %1286 = vtanh.f32 %v453_v3 }
 0x1d3   :  { %v451_v4 = vpop.f32.mrf.mxu3 }
 0x1d4   :  { %v1287_v5 = vpop.eup %1286 }
 0x1d5   :  { %455 = vst [vmem:[#allocation9 + $0x10] sm:$0xff] %v1287_v5  ;;  %v458_v6 = vpack.c.bf16 %v1287_v5, %v1287_v5 }
 0x1d7   :  { %531 = vmatmul.bf16.vlgmr.msrb.gmra.mxu1 %v458_v6 }
 0x254   :  { %v532_v17 = vpop.f32.mrf.mxu1 }
 0x255   :  { %v536_v18 = vadd.f32 %v532_v17, %v187_v16 }
 0x257   :  { %1288 = vtanh.f32 %v536_v18 }
 0x25c   :  { %v534_v19 = vpop.f32.mrf.mxu1 }
 0x25d   :  { %v1289_v20 = vpop.eup %1288 }
 0x25e   :  { %538 = vst [vmem:[#allocation9 + $0x18] sm:$0xff] %v1289_v20  ;;  %v541_v21 = vpack.c.bf16 %v1289_v20, %v1289_v20 }
 0x260   :  { %614 = vmatmul.bf16.vlgmr.msrb.gmra.mxu2 %v541_v21 }
 0x2e3   :  { %v615_v35 = vpop.f32.mrf.mxu2 }
 0x2e4   :  { %v619_v36 = vadd.f32 %v615_v35, %v190_v33 }
 0x2e6   :  { %1290 = vtanh.f32 %v619_v36 }
 0x2eb   :  { %v617_v38 = vpop.f32.mrf.mxu2 }
 0x2ec   :  { %v1291_v39 = vpop.eup %1290 }
 0x2ed   :  { %621 = vst [vmem:[#allocation9 + $0x20] sm:$0xff] %v1291_v39  ;;  %v624_v40 = vpack.c.bf16 %v1291_v39, %v1291_v39 }
 0x2ef   :  { %697 = vmatmul.bf16.vlgmr.msrb.gmra.mxu3 %v624_v40 }
 0x372   :  { %v698_v49 = vpop.f32.mrf.mxu3 }
 0x373   :  { %v702_v50 = vadd.f32 %v698_v49, %v192_v48 }
 0x375   :  { %1292 = vtanh.f32 %v702_v50 }
 0x37a   :  { %v700_v51 = vpop.f32.mrf.mxu3 }
 0x37b   :  { %v1293_v52 = vpop.eup %1292 }
 0x37c   :  { %704 = vst [vmem:[#allocation9 + $0x28] sm:$0xff] %v1293_v52  ;;  %v707_v53 = vpack.c.bf16 %v1293_v52, %v1293_v52 }
 0x37e   :  { %780 = vmatmul.bf16.vlgmr.msrb.gmra.mxu0 %v707_v53 }
 0x3fb   :  { %v781_v60 = vpop.f32.mrf.mxu0 }
 0x3fc   :  { %v785_v61 = vadd.f32 %v781_v60, %v195_v59 }
 0x3fe   :  { %1294 = vtanh.f32 %v785_v61 }
 0x403   :  { %v783_v62 = vpop.f32.mrf.mxu0 }
 0x404   :  { %v1295_v63 = vpop.eup %1294 }
 0x405   :  { %787 = vst [vmem:[#allocation9 + $0x30] sm:$0xff] %v1295_v63  ;;  %v790_v0 = vpack.c.bf16 %v1295_v63, %v1295_v63 }
 0x407   :  { %863 = vmatmul.bf16.vlgmr.msra.gmra.mxu1 %v790_v0 }
 0x484   :  { %v864_v2 = vpop.f32.mrf.mxu1 }
 0x485   :  { %v868_v3 = vadd.f32 %v864_v2, %v197_v1 }
 0x487   :  { %1296 = vtanh.f32 %v868_v3 }
 0x48c   :  { %v866_v4 = vpop.f32.mrf.mxu1 }
 0x48d   :  { %v1297_v5 = vpop.eup %1296 }
 0x48e   :  { %870 = vst [vmem:[#allocation9 + $0x38] sm:$0xff] %v1297_v5 }
 0x48f   :  { %884 = dma.vmem_to_hbm [thread:$0]  %s877_s5, 1024, %s879_s8, [#allocation5], %s1407_s9, %s1407_s9, %s1408_s10  }
 0x490   :  { %1398 = dma.done.wait [#allocation5], 1024  }
 0x491   :  { %1399 = vsyncadd [#allocation5], 4294966272 }
 0x492   :  { %889 = vsyncpa [#allocation4], 1 }
 0x493   :  { %890 = vsyncpa [#allocation7], 1 }
 0x494   :  { %891 = vsyncpa [#allocation5], 1 }

</bundles_post_ra>
